<compile_context>
chip_gen: v7x
topology: tpu7x:2x2x1
jax: 0.10.0
libtpu: 0.0.40
codegen_flags: <defaults>
</compile_context>

<pallas_src>
import functools

import jax
import jax.numpy as jnp
from jax.experimental import pallas as pl
from jax.experimental.pallas import tpu as pltpu


# ----------------------------------------------------------------------------- helpers
def _round_up(x, m):
    return ((x + m - 1) // m) * m


def _cdiv(a, b):
    return (a + b - 1) // b


# ----------------------------------------------------------------------------- kernel
def _coor_mlp_kernel(x_ref, w1_ref, b1_ref, w2_ref, b2_ref, w3_ref, b3_ref, o_ref):
    """3-layer MLP: (Linear + ReLU) x2 + Linear, on one (tm, D) row tile."""
    x = x_ref[...].astype(jnp.float32)

    h1 = jnp.dot(x, w1_ref[...], preferred_element_type=jnp.float32) + b1_ref[...]
    h1 = jnp.maximum(h1, 0.0)

    h2 = jnp.dot(h1, w2_ref[...], preferred_element_type=jnp.float32) + b2_ref[...]
    h2 = jnp.maximum(h2, 0.0)

    # w3/b3 are zero-padded to a 128-column multiple -> lane-dense (unmasked) stores.
    out = jnp.dot(h2, w3_ref[...], preferred_element_type=jnp.float32) + b3_ref[...]
    o_ref[...] = out.astype(o_ref.dtype)


def coor_mlp_pallas(x_parts, params, tm_max=2048):
    """Apply the coor_mlp to one or more (rows_i, D) matrices fused into a single
    row-tiled pallas_call.  Returns a list of (rows_i, out_dim) results."""
    if not isinstance(x_parts, (list, tuple)):
        x_parts = [x_parts]
    D = x_parts[0].shape[1]
    row_counts = [int(x.shape[0]) for x in x_parts]
    rows = sum(row_counts)
    out_dim = params["w3"].shape[1]

    # Lane-dense output: pad final-layer columns up to a multiple of 128 with zeros.
    out_pad = _round_up(out_dim, 128)
    w3, b3 = params["w3"], params["b3"]
    if out_pad != out_dim:
        w3 = jnp.pad(w3, ((0, 0), (0, out_pad - out_dim)))
        b3 = jnp.pad(b3, ((0, 0), (0, out_pad - out_dim)))

    # Tile selection: tiles as large as possible (amortize per-step overhead), but keep
    # the grid >= 2 steps so a v7x chip's two TensorCores both get work.
    grid_n = max(2, _cdiv(rows, tm_max))
    tm = _round_up(_cdiv(rows, grid_n), 8)
    padded_rows = grid_n * tm

    # Fold zero row-padding into the concat -> input materialized exactly once.
    pieces = list(x_parts)
    pad_rows = padded_rows - rows
    if pad_rows:
        pieces.append(jnp.zeros((pad_rows, D), x_parts[0].dtype))
    x_flat = pieces[0] if len(pieces) == 1 else jnp.concatenate(pieces, axis=0)

    out = pl.pallas_call(
        _coor_mlp_kernel,
        out_shape=jax.ShapeDtypeStruct((padded_rows, out_pad), x_flat.dtype),
        grid_spec=pltpu.PrefetchScalarGridSpec(
            num_scalar_prefetch=0,
            grid=(grid_n,),
            in_specs=[
                pl.BlockSpec((tm, D), lambda i: (i, 0)),         # x row tile
                pl.BlockSpec((D, D), lambda i: (0, 0)),          # W1
                pl.BlockSpec((1, D), lambda i: (0, 0)),          # b1
                pl.BlockSpec((D, D), lambda i: (0, 0)),          # W2
                pl.BlockSpec((1, D), lambda i: (0, 0)),          # b2
                pl.BlockSpec((D, out_pad), lambda i: (0, 0)),    # W3 (lane-padded)
                pl.BlockSpec((1, out_pad), lambda i: (0, 0)),    # b3 (lane-padded)
            ],
            out_specs=pl.BlockSpec((tm, out_pad), lambda i: (i, 0)),
        ),
        compiler_params=pltpu.CompilerParams(dimension_semantics=("parallel",)),
    )(
        x_flat,
        params["w1"], params["b1"],
        params["w2"], params["b2"],
        w3, b3,
    )

    # Split back per input part and drop the row/column padding.
    outs, start = [], 0
    for rc in row_counts:
        outs.append(out[start:start + rc, :out_dim])
        start += rc
    return outs


# ----------------------------------------------------------------------------- module
def init_mask_regressor_params(key, d_embed, group_size, dtype=jnp.float32):
    """Deterministic init mimicking torch.nn.Linear defaults (uniform +/- 1/sqrt(fan_in)).

    Weights are stored transposed: shape (in_dim, out_dim)."""
    dims = [(d_embed, d_embed), (d_embed, d_embed), (d_embed, 3 * group_size)]
    params = {}
    keys = jax.random.split(key, 2 * len(dims))
    for idx, (din, dout) in enumerate(dims):
        bound = 1.0 / (din ** 0.5)
        w = jax.random.uniform(keys[2 * idx], (din, dout), dtype, -bound, bound)
        b = jax.random.uniform(keys[2 * idx + 1], (1, dout), dtype, -bound, bound)
        params[f"w{idx + 1}"] = w
        params[f"b{idx + 1}"] = b
    return params


def mask_regressor_forward(params, src_feats_padded, tgt_feats_padded,
                           src_xyz=None, tgt_xyz=None):
    """JAX/Pallas equivalent of MaskRegressor.forward.

    src_feats_padded: (N_pred, N_src, B, D)
    tgt_feats_padded: (N_pred, N_tgt, B, D)
    src_xyz / tgt_xyz: ignored (the PyTorch forward pads them but never uses the result).
    """
    # TODO(synk): pad_sequence(src_xyz/tgt_xyz) in the reference produces values that are
    # never used or returned; skipped here.
    n_pred, g_src, B, D = src_feats_padded.shape
    _, g_tgt, _, _ = tgt_feats_padded.shape
    out_dim = params["w3"].shape[1]  # 3 * group_size

    src_flat = src_feats_padded.reshape(-1, D)
    tgt_flat = tgt_feats_padded.reshape(-1, D)

    # Single fused pallas_call over src + tgt rows.
    src_out, tgt_out = coor_mlp_pallas([src_flat, tgt_flat], params)
    src_mlp = src_out.reshape(n_pred, g_src, B, out_dim)
    tgt_mlp = tgt_out.reshape(n_pred, g_tgt, B, out_dim)

    # .transpose(1, 2) in torch == swap axes 1 and 2; then row-major reshape to (g*B, -1, 3).
    src_corr = jnp.transpose(src_mlp, (0, 2, 1, 3)).reshape(g_src * B, -1, 3)
    tgt_corr = jnp.transpose(tgt_mlp, (0, 2, 1, 3)).reshape(g_tgt * B, -1, 3)
    return src_corr, tgt_corr


# ----------------------------------------------------------------------------- reference
def _coor_mlp_ref(x, params):
    h = jnp.maximum(x @ params["w1"] + params["b1"], 0.0)
    h = jnp.maximum(h @ params["w2"] + params["b2"], 0.0)
    return h @ params["w3"] + params["b3"]


def _forward_ref(params, src, tgt):
    n_pred, g_src, B, D = src.shape
    _, g_tgt, _, _ = tgt.shape
    s = _coor_mlp_ref(src, params)
    t = _coor_mlp_ref(tgt, params)
    s = jnp.transpose(s, (0, 2, 1, 3)).reshape(g_src * B, -1, 3)
    t = jnp.transpose(t, (0, 2, 1, 3)).reshape(g_tgt * B, -1, 3)
    return s, t


# ----------------------------------------------------------------------------- main
if __name__ == "__main__":
    d_embed = 32
    group_size = 4
    n_pred, g_src, g_tgt, B = 2, 8, 6, 2

    key = jax.random.PRNGKey(0)
    k_params, k_src, k_tgt = jax.random.split(key, 3)

    params = init_mask_regressor_params(k_params, d_embed, group_size)
    src_feats = jax.random.normal(k_src, (n_pred, g_src, B, d_embed), jnp.float32)
    tgt_feats = jax.random.normal(k_tgt, (n_pred, g_tgt, B, d_embed), jnp.float32)

    src_corr, tgt_corr = jax.jit(functools.partial(mask_regressor_forward, params))(
        src_feats, tgt_feats
    )
    jax.block_until_ready((src_corr, tgt_corr))

    # sanity check against plain-JAX reference
    src_ref, tgt_ref = _forward_ref(params, src_feats, tgt_feats)
    assert src_corr.shape == (g_src * B, n_pred * group_size, 3), src_corr.shape
    assert tgt_corr.shape == (g_tgt * B, n_pred * group_size, 3), tgt_corr.shape
    assert jnp.allclose(src_corr, src_ref, atol=1e-5, rtol=1e-5)
    assert jnp.allclose(tgt_corr, tgt_ref, atol=1e-5, rtol=1e-5)

    print("KERNEL_OK")
</pallas_src>

<mosaic_0001>
module attributes {stable_mosaic.version = 11 : i64} {
  func.func @_coor_mlp_kernel(%arg0: i32, %arg1: memref<32x32xf32, #tpu.memory_space<vmem>>, %arg2: memref<32x32xf32, #tpu.memory_space<vmem>>, %arg3: memref<1x32xf32, #tpu.memory_space<vmem>>, %arg4: memref<32x32xf32, #tpu.memory_space<vmem>>, %arg5: memref<1x32xf32, #tpu.memory_space<vmem>>, %arg6: memref<32x128xf32, #tpu.memory_space<vmem>>, %arg7: memref<1x128xf32, #tpu.memory_space<vmem>>, %arg8: memref<32x128xf32, #tpu.memory_space<vmem>>) attributes {dimension_semantics = [#tpu.dimension_semantics<parallel>], iteration_bounds = array<i64: 2>, scalar_prefetch = 0 : i64, scratch_operands = 0 : i64, tpu.core_type = #tpu.core_type<tc>, window_params = [{transform_indices = @transform_0, window_bounds = array<i64: 32, 32>}, {pipeline_mode = #tpu.pipeline_mode<synchronous>, transform_indices = @transform_1, window_bounds = array<i64: 32, 32>}, {pipeline_mode = #tpu.pipeline_mode<synchronous>, transform_indices = @transform_2, window_bounds = array<i64: 1, 32>}, {pipeline_mode = #tpu.pipeline_mode<synchronous>, transform_indices = @transform_3, window_bounds = array<i64: 32, 32>}, {pipeline_mode = #tpu.pipeline_mode<synchronous>, transform_indices = @transform_4, window_bounds = array<i64: 1, 32>}, {pipeline_mode = #tpu.pipeline_mode<synchronous>, transform_indices = @transform_5, window_bounds = array<i64: 32, 128>}, {pipeline_mode = #tpu.pipeline_mode<synchronous>, transform_indices = @transform_6, window_bounds = array<i64: 1, 128>}, {transform_indices = @transform_7, window_bounds = array<i64: 32, 128>}]} {
    %c0 = arith.constant 0 : index
    %c0_0 = arith.constant 0 : index
    %0 = vector.load %arg1[%c0, %c0_0] : memref<32x32xf32, #tpu.memory_space<vmem>>, vector<32x32xf32>
    %c0_1 = arith.constant 0 : index
    %c0_2 = arith.constant 0 : index
    %1 = vector.load %arg2[%c0_1, %c0_2] : memref<32x32xf32, #tpu.memory_space<vmem>>, vector<32x32xf32>
    %cst = arith.constant dense<0.000000e+00> : vector<32x32xf32>
    %2 = tpu.matmul %0, %1, %cst {dimension_numbers = #tpu.dot_dimension_numbers<[1], [0], [0], [1], [0, 0, 1, 1], [], []>} : vector<32x32xf32>, vector<32x32xf32>, vector<32x32xf32> -> vector<32x32xf32>
    %c0_3 = arith.constant 0 : index
    %c0_4 = arith.constant 0 : index
    %3 = vector.load %arg3[%c0_3, %c0_4] : memref<1x32xf32, #tpu.memory_space<vmem>>, vector<1x32xf32>
    %4 = vector.broadcast %3 : vector<1x32xf32> to vector<32x32xf32>
    %5 = arith.addf %2, %4 : vector<32x32xf32>
    %cst_5 = arith.constant 0.000000e+00 : f32
    %6 = vector.broadcast %cst_5 : f32 to vector<32x32xf32>
    %7 = arith.maximumf %5, %6 : vector<32x32xf32>
    %c0_6 = arith.constant 0 : index
    %c0_7 = arith.constant 0 : index
    %8 = vector.load %arg4[%c0_6, %c0_7] : memref<32x32xf32, #tpu.memory_space<vmem>>, vector<32x32xf32>
    %cst_8 = arith.constant dense<0.000000e+00> : vector<32x32xf32>
    %9 = tpu.matmul %7, %8, %cst_8 {dimension_numbers = #tpu.dot_dimension_numbers<[1], [0], [0], [1], [0, 0, 1, 1], [], []>} : vector<32x32xf32>, vector<32x32xf32>, vector<32x32xf32> -> vector<32x32xf32>
    %c0_9 = arith.constant 0 : index
    %c0_10 = arith.constant 0 : index
    %10 = vector.load %arg5[%c0_9, %c0_10] : memref<1x32xf32, #tpu.memory_space<vmem>>, vector<1x32xf32>
    %11 = vector.broadcast %10 : vector<1x32xf32> to vector<32x32xf32>
    %12 = arith.addf %9, %11 : vector<32x32xf32>
    %cst_11 = arith.constant 0.000000e+00 : f32
    %13 = vector.broadcast %cst_11 : f32 to vector<32x32xf32>
    %14 = arith.maximumf %12, %13 : vector<32x32xf32>
    %c0_12 = arith.constant 0 : index
    %c0_13 = arith.constant 0 : index
    %15 = vector.load %arg6[%c0_12, %c0_13] : memref<32x128xf32, #tpu.memory_space<vmem>>, vector<32x128xf32>
    %cst_14 = arith.constant dense<0.000000e+00> : vector<32x128xf32>
    %16 = tpu.matmul %14, %15, %cst_14 {dimension_numbers = #tpu.dot_dimension_numbers<[1], [0], [0], [1], [0, 0, 1, 1], [], []>} : vector<32x32xf32>, vector<32x128xf32>, vector<32x128xf32> -> vector<32x128xf32>
    %c0_15 = arith.constant 0 : index
    %c0_16 = arith.constant 0 : index
    %17 = vector.load %arg7[%c0_15, %c0_16] : memref<1x128xf32, #tpu.memory_space<vmem>>, vector<1x128xf32>
    %18 = vector.broadcast %17 : vector<1x128xf32> to vector<32x128xf32>
    %19 = arith.addf %16, %18 : vector<32x128xf32>
    %c0_17 = arith.constant 0 : index
    %c0_18 = arith.constant 0 : index
    %20 = vector.load %arg8[%c0_17, %c0_18] : memref<32x128xf32, #tpu.memory_space<vmem>>, vector<32x128xf32>
    tpu.vector_store %arg8[%c0_17, %c0_18], %19 {strides = array<i32>} : memref<32x128xf32, #tpu.memory_space<vmem>>, vector<32x128xf32>,
    return
  }
  func.func @transform_0(%arg0: i32) -> (i32, i32) {
    %c0_i32 = arith.constant 0 : i32
    %c0_i32_0 = arith.constant 0 : i32
    return %arg0, %c0_i32 : i32, i32
  }
  func.func @transform_1(%arg0: i32) -> (i32, i32) {
    %c0_i32 = arith.constant 0 : i32
    %c0_i32_0 = arith.constant 0 : i32
    %c0_i32_1 = arith.constant 0 : i32
    return %c0_i32, %c0_i32_0 : i32, i32
  }
  func.func @transform_2(%arg0: i32) -> (i32, i32) {
    %c0_i32 = arith.constant 0 : i32
    %c0_i32_0 = arith.constant 0 : i32
    %c0_i32_1 = arith.constant 0 : i32
    return %c0_i32, %c0_i32_0 : i32, i32
  }
  func.func @transform_3(%arg0: i32) -> (i32, i32) {
    %c0_i32 = arith.constant 0 : i32
    %c0_i32_0 = arith.constant 0 : i32
    %c0_i32_1 = arith.constant 0 : i32
    return %c0_i32, %c0_i32_0 : i32, i32
  }
  func.func @transform_4(%arg0: i32) -> (i32, i32) {
    %c0_i32 = arith.constant 0 : i32
    %c0_i32_0 = arith.constant 0 : i32
    %c0_i32_1 = arith.constant 0 : i32
    return %c0_i32, %c0_i32_0 : i32, i32
  }
  func.func @transform_5(%arg0: i32) -> (i32, i32) {
    %c0_i32 = arith.constant 0 : i32
    %c0_i32_0 = arith.constant 0 : i32
    %c0_i32_1 = arith.constant 0 : i32
    return %c0_i32, %c0_i32_0 : i32, i32
  }
  func.func @transform_6(%arg0: i32) -> (i32, i32) {
    %c0_i32 = arith.constant 0 : i32
    %c0_i32_0 = arith.constant 0 : i32
    %c0_i32_1 = arith.constant 0 : i32
    return %c0_i32, %c0_i32_0 : i32, i32
  }
  func.func @transform_7(%arg0: i32) -> (i32, i32) {
    %c0_i32 = arith.constant 0 : i32
    %c0_i32_0 = arith.constant 0 : i32
    return %arg0, %c0_i32 : i32, i32
  }
}

</mosaic_0001>

<bundles_post_ra>
// kernel: mask_regressor_forward.1
= control target key start
LH: loop header
LB: loop body
LE: loop exit
PB: predicated region body
PF: predicated region fallthrough
CT: control target
= control target key end

     0   :  { %s855_s24 = smov 0   ;;  %s936_s0 = inlined_call_operand.vmem [shape: f32[64,32], index: 0, kind: input, shape index: {}]   ;;  %s937_s1 = inlined_call_operand.vmem [shape: f32[32,32], index: 1, kind: input, shape index: {}]   ;;  %s938_s2 = inlined_call_operand.vmem [shape: f32[1,32], index: 2, kind: input, shape index: {}]   ;;  %s939_s3 = inlined_call_operand.vmem [shape: f32[32,32], index: 3, kind: input, shape index: {}]   ;;  %s940_s4 = inlined_call_operand.vmem [shape: f32[1,32], index: 4, kind: input, shape index: {}]   ;;  %s941_s5 = inlined_call_operand.vmem [shape: f32[32,128], index: 5, kind: input, shape index: {}]   ;;  %s942_s6 = inlined_call_operand.vmem [shape: f32[1,128], index: 6, kind: input, shape index: {}]   ;;  %s943_s7 = inlined_call_operand.vmem [shape: f32[64,128], index: 7, kind: output, shape index: {}]  }
   0x1 LB: > { %s679_s25 = sadd.s32 4294967295, %s813_s24   ;;  %p683_p0 = scmp.ge.s32.totalorder %s813_s24, 1  ;;  %s813_s24 = sphi %s855_s24, %s17_s24  }
   0x2   : > { %p238_p1 = scmp.lt.s32.totalorder %s813_s24, 3 }
   0x4   : > { %p239_p2 = pnand %p683_p0, %p238_p1 }
   0x5   : > { %v286_v0 = vld [vmem:[%s937_s1] sm:$0xff] (!%p239_p2)  ;;  %v287_v1 = vld [vmem:[%s937_s1 + $0x8] sm:$0xff] (!%p239_p2)  ;;  %v288_v2 = vld [vmem:[%s937_s1 + $0x10] sm:$0xff] (!%p239_p2)  ;;  %s684_s9 = sshll.u32 (!%p239_p2), %s679_s25, 2  ;;  %vm297_vm0 = vcmask (!%p239_p2), 261120  }
   0x6   : > { %242 = sbr.rel (%p239_p2) target bundleno = 674 (0x2a2), region = 48  ;;  %v771_v3 = vpack.c.bf16 (!%p239_p2), %v287_v1, %v286_v0  ;;  %v289_v4 = vld [vmem:[%s937_s1 + $0x18] sm:$0xff] (!%p239_p2)  ;;  %p271_p3 = scmp.lt.s32.totalorder (!%p239_p2), %s684_s9, 7  ;;  %v399_v5 = vld [vmem:[%s939_s3] sm:$0xff] (!%p239_p2)  ;;  %v400_v6 = vld [vmem:[%s939_s3 + $0x8] sm:$0xff] (!%p239_p2) }
   0x7   : > { %v775_v7 = vpack.c.bf16 (!%p239_p2), %v289_v4, %v288_v2  ;;  %v779_v8 = vpack.c.bf16 (!%p239_p2), %v400_v6, %v399_v5  ;;  %v401_v13 = vld [vmem:[%s939_s3 + $0x10] sm:$0xff] (!%p239_p2)  ;;  %v402_v14 = vld [vmem:[%s939_s3 + $0x18] sm:$0xff] (!%p239_p2)  ;;  %v511_v16 = vld [vmem:[%s941_s5] sm:$0xff] (!%p239_p2) }
   0x8   : > { %772 = vmatprep.subr.bf16.mxu0 (!%p239_p2), %v771_v3  ;;  %v783_v15 = vpack.c.bf16 (!%p239_p2), %v402_v14, %v401_v13  ;;  %v512_v17 = vld [vmem:[%s941_s5 + $0x8] sm:$0xff] (!%p239_p2)  ;;  %v688_v19 = vld [vmem:[%s938_s2] ss:$0 sm:$0xff] (!%p239_p2)  ;;  %v513_v32 = vld [vmem:[%s941_s5 + $0x10] sm:$0xff] (!%p239_p2) }
   0x9   : > { %774 = vmatpush3.bf16.msra.mxu0 (!%p239_p2), %v771_v3  ;;  %780 = vmatprep.subr.bf16.mxu1 (!%p239_p2), %v779_v8  ;;  %v787_v18 = vpack.c.bf16 (!%p239_p2), %v512_v17, %v511_v16  ;;  %v514_v33 = vld [vmem:[%s941_s5 + $0x18] sm:$0xff] (!%p239_p2)  ;;  %v693_v35 = vld [vmem:[%s940_s4] ss:$0 sm:$0xff] (!%p239_p2) }
   0xa   : > { %776 = vmatprep.subr.bf16.mxu0 (!%p239_p2), %v775_v7  ;;  %782 = vmatpush3.bf16.msra.mxu1 (!%p239_p2), %v779_v8  ;;  %v791_v34 = vpack.c.bf16 (!%p239_p2), %v514_v33, %v513_v32  ;;  %v698_v48 = vld [vmem:[%s942_s6] ss:$0 sm:$0xff] (!%p239_p2) }
   0xb   : > { %784 = vmatprep.subr.bf16.mxu1 (!%p239_p2), %v783_v15 }
   0xd   : > { %s945_s9 = smov (!%p271_p3, %s684_s9), 7  ;;  %778 = vmatpush3.bf16.msra.mxu0 %v775_v7 }
   0xe   : > { %s685_s16 = sshll.u32 %s945_s9, 3  ;;  %786 = vmatpush3.bf16.msra.mxu1 %v783_v15  ;;  %788 = vmatprep.subr.bf16.mxu0 %v787_v18 }
   0xf   : > { %s274_s19 = scalar_lea.vmem %s936_s0, %s685_s16  ;;  %795 = vmatprep.subr.bf16.mxu1 %v787_v18  ;;  %s280_s20 = scalar_lea.vmem %s943_s7, %s685_s16 }
  0x10   : > { %v282_v9 = vld [vmem:[%s274_s19] sm:$0xff]  ;;  %v283_v10 = vld [vmem:[%s274_s19 + $0x8] sm:$0xff]  ;;  %v284_v11 = vld [vmem:[%s274_s19 + $0x10] sm:$0xff] }
  0x11   : > { %737 = vmatprep.mubr.msk.f32.mxu0 %vm297_vm0, %v282_v9  ;;  %v285_v12 = vld [vmem:[%s274_s19 + $0x18] sm:$0xff] }
  0x12   : > { %738 = vmatmul.mubr.msk.f32.vlgmr.msra.gmra.mrb[0].mxu0 %vm297_vm0, %v283_v10 }
  0x13   : > { %740 = vmatprep.mubr.msk.f32.mxu0 %vm297_vm0, %v284_v11  ;;  %790 = vmatpush3.bf16.msra.mxu0 %v787_v18 }
  0x14   : > { %792 = vmatprep.subr.bf16.mxu0 %v791_v34 }
  0x16   : > { %741 = vmatmul.mubr.msk.f32.gmra.mrb[2].mxu0 %vm297_vm0, %v285_v12 }
  0x17   : > { %794 = vmatpush3.bf16.msra.mxu0 %v791_v34 }
  0xe5   : > { %v739_v20 = vpop.f32.mrb[0].mxu0 }
  0xe6   : > { %v382_v21 = vadd.f32 %v739_v20, %v688_v19  ;;  %v376_v22 = vpop.f32.mrb[1].mxu0 }
  0xe7   : > { %v377_v23 = vadd.f32 %v688_v19, %v376_v22 }
  0xe8   : > { %v396_v26 = vmax.f32 %v382_v21, 0.0 }
  0xe9   : > { %v395_v24 = vmax.f32 %v377_v23, 0.0  ;;  %v742_v25 = vpop.f32.mrb[2].mxu0 }
  0xea   : > { %v392_v27 = vadd.f32 %v742_v25, %v688_v19  ;;  %v386_v28 = vpop.f32.mrb[3].mxu0 }
  0xeb   : > { %v387_v29 = vadd.f32 %v688_v19, %v386_v28  ;;  %751 = vmatprep.mubr.msk.f32.mxu1 %vm297_vm0, %v395_v24 }
  0xec   : > { %752 = vmatmul.mubr.msk.f32.vlgmr.msra.gmra.mrb[0].mxu1 %vm297_vm0, %v396_v26  ;;  %v398_v31 = vmax.f32 %v392_v27, 0.0 }
  0xed   : > { %v397_v30 = vmax.f32 %v387_v29, 0.0  ;;  %797 = vmatpush3.bf16.msra.mxu1 %v787_v18 }
  0xee   : > { %796 = vmatprep.subr.bf16.mxu1 %v791_v34 }
  0xef   : > { %754 = vmatprep.mubr.msk.f32.mxu1 %vm297_vm0, %v397_v30 }
  0xf0   : > { %755 = vmatmul.mubr.msk.f32.gmra.mrb[2].mxu1 %vm297_vm0, %v398_v31 }
  0xf1   : > { %798 = vmatpush3.bf16.msra.mxu1 %v791_v34 }
 0x1bf   : > { %v753_v36 = vpop.f32.mrb[0].mxu1 }
 0x1c0   : > { %v494_v37 = vadd.f32 %v753_v36, %v693_v35  ;;  %v488_v38 = vpop.f32.mrb[1].mxu1 }
 0x1c1   : > { %v489_v39 = vadd.f32 %v693_v35, %v488_v38 }
 0x1c2   : > { %v508_v42 = vmax.f32 %v494_v37, 0.0 }
 0x1c3   : > { %v507_v40 = vmax.f32 %v489_v39, 0.0  ;;  %v756_v41 = vpop.f32.mrb[2].mxu1 }
 0x1c4   : > { %v504_v43 = vadd.f32 %v756_v41, %v693_v35  ;;  %v498_v44 = vpop.f32.mrb[3].mxu1 }
 0x1c5   : > { %v499_v45 = vadd.f32 %v693_v35, %v498_v44  ;;  %765 = vmatprep.mubr.msk.f32.mxu0 %vm297_vm0, %v507_v40 }
 0x1c6   : > { %766 = vmatmul.mubr.msk.f32.vlgmr.msra.gmra.mrb[4].mxu0 %vm297_vm0, %v508_v42  ;;  %v510_v47 = vmax.f32 %v504_v43, 0.0 }
 0x1c7   : > { %v509_v46 = vmax.f32 %v499_v45, 0.0 }
 0x1c9   : > { %768 = vmatprep.mubr.msk.f32.mxu1 %vm297_vm0, %v509_v46 }
 0x1ca   : > { %769 = vmatmul.mubr.msk.f32.vlgmr.msra.gmra.mrb[4].mxu1 %vm297_vm0, %v510_v47 }
 0x299   : > { %v767_v49 = vpop.f32.mrb[4].mxu0 }
 0x29a   : > { %v600_v50 = vpop.f32.mrb[5].mxu0  ;;  %v606_v52 = vadd.f32 %v767_v49, %v698_v48 }
 0x29b   : > { %v601_v51 = vadd.f32 %v698_v48, %v600_v50 }
 0x29c   : > { %620 = vst [vmem:[%s280_s20 + $0x8] sm:$0xff] %v606_v52 }
 0x29d   : > { %619 = vst [vmem:[%s280_s20] sm:$0xff] %v601_v51  ;;  %v770_v53 = vpop.f32.mrb[4].mxu1 }
 0x29e   : > { %v610_v54 = vpop.f32.mrb[5].mxu1  ;;  %v616_v56 = vadd.f32 %v770_v53, %v698_v48 }
 0x29f   : > { %v611_v55 = vadd.f32 %v698_v48, %v610_v54 }
 0x2a0   : > { %622 = vst [vmem:[%s280_s20 + $0x18] sm:$0xff] %v616_v56 }
 0x2a1   : > { %621 = vst [vmem:[%s280_s20 + $0x10] sm:$0xff] %v611_v55 }
 0x2a2 PF: > { %s17_s24 = sadd.s32 1, %s813_s24  }
 0x2a3   : > { %p14_p4 = scmp.ge.s32.totalorder %s17_s24, 4  }
 0x2a5   :  { %16 = sbr.rel (!%p14_p4) target bundleno = 1 (0x1), region = 78 }

</bundles_post_ra>
